<compile_context>
chip_gen: v5e
topology: v5e:2x2
jax: 0.10.0
libtpu: 0.0.40
codegen_flags: <defaults>
</compile_context>

<pallas_src>
import jax
import jax.numpy as jnp
from jax.experimental import pallas as pl
from jax.experimental.pallas import tpu as pltpu


def _round_up(x, m):
    return ((x + m - 1) // m) * m


# ---------------------------------------------------------------------------
# Kernels
# ---------------------------------------------------------------------------
def _mlp_kernel_single_k(x_ref, w_ref, b_ref, o_ref):
    # Whole reduction dim resident in VMEM: one MXU pass, no scratch acc.
    acc = jnp.dot(x_ref[...], w_ref[...], preferred_element_type=jnp.float32)
    o_ref[...] = jnp.maximum(acc + b_ref[...], 0.0).astype(o_ref.dtype)


def _mlp_kernel_multi_k(x_ref, w_ref, b_ref, o_ref, acc_ref):
    # Grid (M//tm, N//tn, K//tk); reduction (K) axis last.
    k = pl.program_id(2)

    @pl.when(k == 0)
    def _():
        acc_ref[...] = jnp.zeros_like(acc_ref)

    acc_ref[...] += jnp.dot(
        x_ref[...], w_ref[...], preferred_element_type=jnp.float32
    )

    @pl.when(k == pl.num_programs(2) - 1)
    def _():
        # Epilogue in f32 (bias + ReLU); cast only at the final store.
        y = acc_ref[...] + b_ref[...]
        o_ref[...] = jnp.maximum(y, 0.0).astype(o_ref.dtype)


# ---------------------------------------------------------------------------
# Wrapper
# ---------------------------------------------------------------------------
def _vmem_capacity_bytes():
    try:
        return int(pltpu.get_tpu_info().vmem_capacity_bytes)
    except Exception:
        return 64 * 1024 * 1024  # conservative (v7x per-core)


def mlp_forward(x, w, b, *, tm=None, tn=None, tk=None,
                compute_dtype=jnp.bfloat16, vmem_limit_bytes=None):
    """y = relu(x @ w + b).  x: (B, D_in), w: (D_in, D_out), b: (D_out,)."""
    B, D_in = x.shape
    D_out = w.shape[1]
    out_dtype = x.dtype

    in_bytes = jnp.dtype(compute_dtype).itemsize
    out_bytes = jnp.dtype(out_dtype).itemsize
    sublane = 16 if in_bytes == 2 else 8

    # --- per-generation defaults -------------------------------------------
    vmem_cap = _vmem_capacity_bytes()
    big_vmem = vmem_cap >= 96 * 1024 * 1024            # v5e / v6e (128 MiB)
    if vmem_limit_bytes is None:
        vmem_limit_bytes = 100 * 1024 * 1024 if big_vmem else 48 * 1024 * 1024
        vmem_limit_bytes = min(vmem_limit_bytes, max(vmem_cap - 16 * 1024 * 1024,
                                                     32 * 1024 * 1024))

    auto_tiles = (tm is None) and (tn is None) and (tk is None)
    if tm is None:
        tm = 1024 if big_vmem else 512
    if tn is None:
        tn = 1024 if big_vmem else 512
    if tk is None:
        tk = 2048

    # --- clamp to problem size, keep (sublane, 128) alignment ---------------
    tm = min(tm, _round_up(B, sublane))
    tn = min(tn, _round_up(D_out, 128))
    tk = min(tk, _round_up(D_in, 128))

    # --- shrink tiles until the double-buffered working set fits VMEM -------
    def _ws_bytes(tm_, tn_, tk_):
        single = _round_up(D_in, tk_) == tk_
        return (2 * tm_ * tk_ * in_bytes          # x block (double-buffered)
                + 2 * tk_ * tn_ * in_bytes        # W block
                + 2 * tn_ * 4                     # bias (f32)
                + 2 * tm_ * tn_ * out_bytes       # output block
                + (0 if single else tm_ * tn_ * 4))   # f32 accumulator

    budget = int(vmem_limit_bytes * 0.75)
    for _ in range(32):
        if _ws_bytes(tm, tn, tk) <= budget:
            break
        if tk > 512:
            tk = max(512, tk // 2)
        elif tn > 256:
            tn = max(256, tn // 2)
        elif tm > 256:
            tm = max(256, tm // 2)
        else:
            break

    # --- v7x megacore: guarantee >= 2 parallel output tiles when possible ---
    if auto_tiles:
        grid_m = pl.cdiv(_round_up(B, sublane), tm)
        grid_n = pl.cdiv(_round_up(D_out, 128), tn)
        n_pad = _round_up(D_out, 128)
        if grid_m * grid_n == 1 and n_pad >= 256:
            tn = _round_up(pl.cdiv(n_pad, 2), 128)

    # --- pad (only when needed) and cast ------------------------------------
    M = _round_up(B, tm)
    N = _round_up(D_out, tn)
    K = _round_up(D_in, tk)

    xc = x.astype(compute_dtype)
    wc = w.astype(compute_dtype)
    if (M, K) != (B, D_in):
        xc = jnp.zeros((M, K), compute_dtype).at[:B, :D_in].set(xc)
    if (K, N) != (D_in, D_out):
        wc = jnp.zeros((K, N), compute_dtype).at[:D_in, :D_out].set(wc)
    bp = b.astype(jnp.float32).reshape(1, D_out)
    if N != D_out:
        bp = jnp.zeros((1, N), jnp.float32).at[0, :D_out].set(
            b.astype(jnp.float32))

    cost = pl.CostEstimate(
        flops=2 * M * N * K,
        transcendentals=0,
        bytes_accessed=(M * K + K * N) * in_bytes + N * 4 + M * N * out_bytes,
    )

    if K // tk == 1:
        # Fast path: whole K resident. Grid (j, i) with the batch axis inner
        # -> weight/bias block indices are constant across consecutive steps
        # (revisited in VMEM, not re-streamed from HBM).
        out = pl.pallas_call(
            _mlp_kernel_single_k,
            out_shape=jax.ShapeDtypeStruct((M, N), out_dtype),
            grid=(N // tn, M // tm),
            in_specs=[
                pl.BlockSpec((tm, tk), lambda j, i: (i, 0)),
                pl.BlockSpec((tk, tn), lambda j, i: (0, j)),
                pl.BlockSpec((1, tn), lambda j, i: (0, j)),
            ],
            out_specs=pl.BlockSpec((tm, tn), lambda j, i: (i, j)),
            compiler_params=pltpu.CompilerParams(
                dimension_semantics=("parallel", "parallel"),
                vmem_limit_bytes=vmem_limit_bytes,
            ),
            cost_estimate=cost,
        )(xc, wc, bp)
    else:
        # Fallback: 3-D grid with f32 VMEM accumulator, K innermost.
        out = pl.pallas_call(
            _mlp_kernel_multi_k,
            out_shape=jax.ShapeDtypeStruct((M, N), out_dtype),
            grid=(M // tm, N // tn, K // tk),
            in_specs=[
                pl.BlockSpec((tm, tk), lambda i, j, k: (i, k)),
                pl.BlockSpec((tk, tn), lambda i, j, k: (k, j)),
                pl.BlockSpec((1, tn), lambda i, j, k: (0, j)),
            ],
            out_specs=pl.BlockSpec((tm, tn), lambda i, j, k: (i, j)),
            scratch_shapes=[pltpu.VMEM((tm, tn), jnp.float32)],
            compiler_params=pltpu.CompilerParams(
                dimension_semantics=("parallel", "parallel", "arbitrary"),
                vmem_limit_bytes=vmem_limit_bytes,
            ),
            cost_estimate=cost,
        )(xc, wc, bp)

    if (M, N) != (B, D_out):
        out = out[:B, :D_out]
    return out


def reference(x, w, b):
    return jnp.maximum(x @ w + b[None, :], 0.0)


if __name__ == "__main__":
    key = jax.random.PRNGKey(0)
    k_x, k_w, k_b = jax.random.split(key, 3)

    # Small shapes consistent with the module: MLP(inputdim=32, outputdim=64).
    batch, inputdim, outputdim = 8, 32, 64

    x = jax.random.normal(k_x, (batch, inputdim), dtype=jnp.float32)
    # Deterministic init mimicking nn.Linear's uniform(-1/sqrt(fan_in), +).
    bound = 1.0 / jnp.sqrt(jnp.float32(inputdim))
    w = jax.random.uniform(k_w, (inputdim, outputdim), jnp.float32, -bound, bound)
    b = jax.random.uniform(k_b, (outputdim,), jnp.float32, -bound, bound)

    # 1) Exact-f32 path (matches PyTorch numerics).
    out = mlp_forward(x, w, b, compute_dtype=jnp.float32)
    jax.block_until_ready(out)
    assert out.shape == (batch, outputdim)
    assert jnp.allclose(out, reference(x, w, b), atol=1e-5, rtol=1e-5)

    # 2) Default bf16-MXU path (production default), exercises padding and a
    #    2-tile N grid via the parallel-split heuristic; single-k fast path.
    b2_, i2_, o2_ = 16, 160, 192
    x2 = jax.random.normal(k_x, (b2_, i2_), dtype=jnp.float32)
    w2 = jax.random.uniform(k_w, (i2_, o2_), jnp.float32, -0.1, 0.1)
    bb2 = jax.random.uniform(k_b, (o2_,), jnp.float32, -0.1, 0.1)
    out2 = mlp_forward(x2, w2, bb2)  # bf16 compute, f32 accumulate
    jax.block_until_ready(out2)
    assert out2.shape == (b2_, o2_)
    assert jnp.allclose(out2, reference(x2, w2, bb2), atol=5e-2, rtol=2e-2)

    # 3) Explicit small tiles to exercise the multi-k accumulator fallback.
    out3 = mlp_forward(x2, w2, bb2, tm=8, tn=128, tk=128,
                       compute_dtype=jnp.float32)
    jax.block_until_ready(out3)
    assert out3.shape == (b2_, o2_)
    assert jnp.allclose(out3, reference(x2, w2, bb2), atol=1e-4, rtol=1e-4)

    print("KERNEL_OK")
</pallas_src>

<mosaic_0001>
module attributes {stable_mosaic.version = 11 : i64} {
  func.func @_mlp_kernel_single_k(%arg0: i32, %arg1: i32, %arg2: memref<8x128xf32, #tpu.memory_space<vmem>>, %arg3: memref<128x128xf32, #tpu.memory_space<vmem>>, %arg4: memref<1x128xf32, #tpu.memory_space<vmem>>, %arg5: memref<8x128xf32, #tpu.memory_space<vmem>>) attributes {dimension_semantics = [#tpu.dimension_semantics<parallel>, #tpu.dimension_semantics<parallel>], iteration_bounds = array<i64: 1, 1>, scalar_prefetch = 0 : i64, scratch_operands = 0 : i64, tpu.core_type = #tpu.core_type<tc>, window_params = [{transform_indices = @transform_0, window_bounds = array<i64: 8, 128>}, {transform_indices = @transform_1, window_bounds = array<i64: 128, 128>}, {transform_indices = @transform_2, window_bounds = array<i64: 1, 128>}, {transform_indices = @transform_3, window_bounds = array<i64: 8, 128>}]} {
    %c0 = arith.constant 0 : index
    %c0_0 = arith.constant 0 : index
    %0 = vector.load %arg2[%c0, %c0_0] : memref<8x128xf32, #tpu.memory_space<vmem>>, vector<8x128xf32>
    %c0_1 = arith.constant 0 : index
    %c0_2 = arith.constant 0 : index
    %1 = vector.load %arg3[%c0_1, %c0_2] : memref<128x128xf32, #tpu.memory_space<vmem>>, vector<128x128xf32>
    %cst = arith.constant dense<0.000000e+00> : vector<8x128xf32>
    %2 = tpu.matmul %0, %1, %cst {dimension_numbers = #tpu.dot_dimension_numbers<[1], [0], [0], [1], [0, 0, 1, 1], [], []>} : vector<8x128xf32>, vector<128x128xf32>, vector<8x128xf32> -> vector<8x128xf32>
    %c0_3 = arith.constant 0 : index
    %c0_4 = arith.constant 0 : index
    %3 = vector.load %arg4[%c0_3, %c0_4] : memref<1x128xf32, #tpu.memory_space<vmem>>, vector<1x128xf32>
    %4 = vector.broadcast %3 : vector<1x128xf32> to vector<8x128xf32>
    %5 = arith.addf %2, %4 : vector<8x128xf32>
    %cst_5 = arith.constant 0.000000e+00 : f32
    %6 = vector.broadcast %cst_5 : f32 to vector<8x128xf32>
    %7 = arith.maximumf %5, %6 : vector<8x128xf32>
    %c0_6 = arith.constant 0 : index
    %c0_7 = arith.constant 0 : index
    %8 = vector.load %arg5[%c0_6, %c0_7] : memref<8x128xf32, #tpu.memory_space<vmem>>, vector<8x128xf32>
    tpu.vector_store %arg5[%c0_6, %c0_7], %7 {strides = array<i32>} : memref<8x128xf32, #tpu.memory_space<vmem>>, vector<8x128xf32>,
    return
  }
  func.func @transform_0(%arg0: i32, %arg1: i32) -> (i32, i32) {
    %c0_i32 = arith.constant 0 : i32
    %c0_i32_0 = arith.constant 0 : i32
    return %arg1, %c0_i32 : i32, i32
  }
  func.func @transform_1(%arg0: i32, %arg1: i32) -> (i32, i32) {
    %c0_i32 = arith.constant 0 : i32
    %c0_i32_0 = arith.constant 0 : i32
    return %c0_i32, %arg0 : i32, i32
  }
  func.func @transform_2(%arg0: i32, %arg1: i32) -> (i32, i32) {
    %c0_i32 = arith.constant 0 : i32
    %c0_i32_0 = arith.constant 0 : i32
    return %c0_i32, %arg0 : i32, i32
  }
  func.func @transform_3(%arg0: i32, %arg1: i32) -> (i32, i32) {
    %c0_i32 = arith.constant 0 : i32
    return %arg1, %arg0 : i32, i32
  }
}

</mosaic_0001>

<bundles_post_ra>
// kernel: tpu_custom_call.1
= control target key start
LH: loop header
LB: loop body
LE: loop exit
PB: predicated region body
PF: predicated region fallthrough
CT: control target
= control target key end

     0   :  { %8 = vsyncpa [#allocation3], 0  ;;  %s227_s0 = inlined_call_operand.hbm [shape: f32[8,128], index: 0, kind: input, shape index: {}]   ;;  %s228_s1 = inlined_call_operand.hbm [shape: f32[128,128], index: 1, kind: input, shape index: {}]   ;;  %s229_s2 = inlined_call_operand.vmem [shape: f32[1,128], index: 2, kind: input, shape index: {}]   ;;  %s230_s3 = inlined_call_operand.hbm [shape: f32[8,128], index: 3, kind: output, shape index: {}]  }
   0x1   :  { %9 = vsyncpa [#allocation6], 0 }
   0x2   :  { %10 = vsyncpa [#allocation4], 0  ;;  %s16_s14 = sshll.u32 %s227_s0, 4  ;;  %s190_s15 = smov [#allocation2]   ;;  %s17_s14 = int_to_ptr.hbm [resolvable:$true] %s16_s14 }
   0x3   :  { %s18_s16 = sshll.u32 %s190_s15, 4  ;;  %s26_s19 = sshll.u32 %s228_s1, 4  ;;  %s19_s16 = int_to_ptr.vmem [resolvable:$true] %s18_s16  ;;  %s27_s19 = int_to_ptr.hbm [resolvable:$true] %s26_s19 }
   0x4   :  { %21 = dma.hbm_to_vmem [thread:$0]  %s17_s14, 128, %s19_s16, [#allocation3]  }
   0x5   :  { %s191_s20 = smov [#allocation5]   ;;  %s192_s22 = smov 128  }
   0x6   :  { %s28_s21 = sshll.u32 %s191_s20, 4  ;;  %s193_s23 = smov 8   ;;  %s29_s21 = int_to_ptr.vmem [resolvable:$true] %s28_s21 }
   0x7   :  { %34 = dma.hbm_to_vmem [thread:$0]  %s27_s19, 2048, %s29_s21, [#allocation6], %s192_s22, %s192_s22, %s193_s23  }
   0x8   :  { %184 = dma.done.wait [#allocation3], 128  }
   0x9   :  { %185 = vsyncadd [#allocation3], 4294967168 }
   0xa   :  { %186 = dma.done.wait [#allocation6], 2048  }
   0xb   :  { %187 = vsyncadd [#allocation6], 4294965248  ;;  %v61_v0 = vld [vmem:[#allocation5 + $0x78] sm:$0xff]  ;;  %v60_v1 = vld [vmem:[#allocation5 + $0x70] sm:$0xff]  ;;  %s194_s24 = smov [#allocation7]   ;;  %s95_s28 = sshll.u32 %s230_s3, 4  ;;  %s96_s28 = int_to_ptr.hbm [resolvable:$true] %s95_s28 }
   0xc   :  { %66 = vmatpush.msra.mxu0 %v61_v0  ;;  %v59_v2 = vld [vmem:[#allocation5 + $0x68] sm:$0xff]  ;;  %v58_v3 = vld [vmem:[#allocation5 + $0x60] sm:$0xff]  ;;  %v57_v4 = vld [vmem:[#allocation5 + $0x58] sm:$0xff]  ;;  %s93_s25 = sshll.u32 %s194_s24, 4  ;;  %s94_s25 = int_to_ptr.vmem [resolvable:$true] %s93_s25 }
   0xd   :  { %v56_v5 = vld [vmem:[#allocation5 + $0x50] sm:$0xff]  ;;  %v55_v6 = vld [vmem:[#allocation5 + $0x48] sm:$0xff]  ;;  %v54_v7 = vld [vmem:[#allocation5 + $0x40] sm:$0xff] }
   0xe   :  { %67 = vmatpush.msra.mxu0 %v60_v1  ;;  %v53_v8 = vld [vmem:[#allocation5 + $0x38] sm:$0xff]  ;;  %v52_v9 = vld [vmem:[#allocation5 + $0x30] sm:$0xff]  ;;  %v51_v10 = vld [vmem:[#allocation5 + $0x28] sm:$0xff] }
   0xf   :  { %v50_v11 = vld [vmem:[#allocation5 + $0x20] sm:$0xff]  ;;  %v49_v12 = vld [vmem:[#allocation5 + $0x18] sm:$0xff]  ;;  %v48_v13 = vld [vmem:[#allocation5 + $0x10] sm:$0xff] }
  0x10   :  { %68 = vmatpush.msra.mxu0 %v59_v2  ;;  %v47_v14 = vld [vmem:[#allocation5 + $0x8] sm:$0xff]  ;;  %v46_v15 = vld [vmem:[#allocation5] sm:$0xff]  ;;  %v45_v16 = vld [vmem:[#allocation2] sm:$0xff] }
  0x11   :  { %v111_v17 = vld [vmem:[%s229_s2] ss:$0 sm:$0xff] }
  0x12   :  { %69 = vmatpush.msra.mxu0 %v58_v3 }
  0x14   :  { %70 = vmatpush.msra.mxu0 %v57_v4 }
  0x16   :  { %71 = vmatpush.msra.mxu0 %v56_v5 }
  0x18   :  { %72 = vmatpush.msra.mxu0 %v55_v6 }
  0x1a   :  { %73 = vmatpush.msra.mxu0 %v54_v7 }
  0x1c   :  { %74 = vmatpush.msra.mxu0 %v53_v8 }
  0x1e   :  { %75 = vmatpush.msra.mxu0 %v52_v9 }
  0x20   :  { %76 = vmatpush.msra.mxu0 %v51_v10 }
  0x22   :  { %77 = vmatpush.msra.mxu0 %v50_v11 }
  0x24   :  { %78 = vmatpush.msra.mxu0 %v49_v12 }
  0x26   :  { %79 = vmatpush.msra.mxu0 %v48_v13 }
  0x28   :  { %80 = vmatpush.msra.mxu0 %v47_v14 }
  0x2a   :  { %81 = vmatpush.msra.mxu0 %v46_v15 }
  0x2b   :  { %82 = vmatmul.f32.vlgmr.msra.gmra.mxu0 %v45_v16 }
  0xa8   :  { %v83_v18 = vpop.f32.mrf.mxu0 }
  0xa9   :  { %v84_v19 = vadd.f32 %v111_v17, %v83_v18 }
  0xab   :  { %v86_v20 = vmax.f32 %v84_v19, 0.0 }
  0xad   :  { %87 = vst [vmem:[#allocation7] sm:$0xff] %v86_v20 }
  0xae   :  { %98 = dma.vmem_to_hbm [thread:$0]  %s94_s25, 128, %s96_s28, [#allocation4]  }
  0xaf   :  { %188 = dma.done.wait [#allocation4], 128  }
  0xb0   :  { %189 = vsyncadd [#allocation4], 4294967168 }
  0xb1   :  { %103 = vsyncpa [#allocation3], 1 }
  0xb2   :  { %104 = vsyncpa [#allocation6], 1 }
  0xb3   :  { %105 = vsyncpa [#allocation4], 1 }

</bundles_post_ra>
